<compile_context>
chip_gen: v7x
topology: tpu7x:2x2x1
jax: 0.10.0
libtpu: 0.0.40
codegen_flags: <defaults>
</compile_context>

<pallas_src>
import functools

import jax
import jax.numpy as jnp
from jax.experimental import pallas as pl
from jax.experimental.pallas import tpu as pltpu

_IGNORE_INDEX = -100  # PyTorch nn.CrossEntropyLoss default


def _ce_kernel(logits_ref, labels_ref, sum_ref, cnt_ref, *, n_rows, tile_n):
    """One batch tile of softmax cross entropy, accumulated into per-split outputs."""
    t = pl.program_id(1)  # reduction ("arbitrary") axis within this split

    @pl.when(t == 0)
    def _init():
        sum_ref[...] = jnp.zeros_like(sum_ref)
        cnt_ref[...] = jnp.zeros_like(cnt_ref)

    x = logits_ref[...].astype(jnp.float32)              # (tile_n, C) f32
    lbl = labels_ref[...]                                 # (tile_n, 1) int32

    # Numerically-stable log-softmax. Only the shifted tensor (x - m) needs to
    # stay live full-width: the row max m cancels out of (lse - picked).
    m = jnp.max(x, axis=-1, keepdims=True)                # (tile_n, 1)
    xm = x - m                                            # (tile_n, C)
    sumexp = jnp.sum(jnp.exp(xm), axis=-1, keepdims=True)

    # gather xm[i, label_i] via one-hot iota mask (no dynamic gather in VMEM)
    col = jax.lax.broadcasted_iota(jnp.int32, xm.shape, 1)
    picked_shift = jnp.sum(jnp.where(col == lbl, xm, 0.0), axis=-1, keepdims=True)

    per_example = jnp.log(sumexp) - picked_shift          # (tile_n, 1)

    # Mask padded tail rows (last / duplicated tile) and ignore_index labels.
    global_tile = pl.program_id(0) * pl.num_programs(1) + t
    row = global_tile * tile_n + jax.lax.broadcasted_iota(jnp.int32, (tile_n, 1), 0)
    valid = (row < n_rows) & (lbl != _IGNORE_INDEX)

    tile_sum = jnp.sum(jnp.where(valid, per_example, 0.0))
    tile_cnt = jnp.sum(valid.astype(jnp.float32))

    # Per-split accumulator lives in the resident output block (broadcast adds).
    sum_ref[...] += tile_sum
    cnt_ref[...] += tile_cnt


def _vmem_caps():
    """(block-budget bytes, base vmem limit, physical capacity) per generation."""
    try:
        cap = int(pltpu.get_tpu_info().vmem_capacity_bytes)
    except Exception:
        cap = 64 * 1024 * 1024          # v7x-safe fallback (smallest VMEM)
    limit = min(cap // 2, 64 * 1024 * 1024)   # 32 MiB on v7x, 64 MiB on v5e/v6e
    budget = cap // 5                         # ~12.8 MiB on v7x, ~25.6 MiB on v5e/v6e
    return budget, limit, cap


def _choose_tile_n(n, c, itemsize, budget_bytes):
    """Largest batch tile whose working set fits the per-generation budget."""
    # packed-sublane multiple of the input dtype: 8 (f32), 16 (bf16), 32 (int8)
    sub = {4: 8, 2: 16, 1: 32}.get(int(itemsize), 8)
    # per-row VMEM bytes: 2 pipeline buffers of logits in the input dtype, one
    # f32 working copy (x - m), plus the lane-padded (row, 1) int32 label block
    # (2 buffers x 512 B per row).
    per_row = c * (2 * itemsize + 4) + 1024
    t = budget_bytes // per_row
    t = (t // sub) * sub
    t = max(sub, int(t))               # large-C guard: never below one sublane pack
    if t >= n:
        return n                       # single full-extent block (always legal)
    return t


def classification_loss(outputs: jax.Array, labels: jax.Array,
                        tile_n: int | None = None) -> jax.Array:
    """Mean softmax cross-entropy, matching nn.CrossEntropyLoss()(outputs, labels)."""
    assert outputs.ndim == 2, "expected logits of shape (N, C)"
    n, c = outputs.shape
    itemsize = int(jnp.dtype(outputs.dtype).itemsize)
    labels2d = labels.astype(jnp.int32).reshape(n, 1)

    budget, base_limit, cap = _vmem_caps()
    if tile_n is None:
        tile_n = _choose_tile_n(n, c, itemsize, budget)
    tile_n = min(int(tile_n), n)
    num_tiles = pl.cdiv(n, tile_n)

    # Megacore split: independent leading "parallel" axis (2 TCs on v7x).
    n_splits = 2 if num_tiles >= 2 else 1
    tiles_per_split = pl.cdiv(num_tiles, n_splits)

    def in_map(s, t):
        # Clamp so the (possibly duplicated) overflow tile still DMAs a valid
        # block; its rows are masked out in-kernel via the global row index.
        tile = jnp.minimum(s * tiles_per_split + t, num_tiles - 1)
        return (tile, 0)

    def out_map(s, t):
        return (s, 0, 0)

    kernel = functools.partial(_ce_kernel, n_rows=n, tile_n=tile_n)

    # VMEM limit sized to the chosen tile (with headroom), per generation.
    c_pad = max(pl.cdiv(c, 128) * 128, 128)
    need = tile_n * c_pad * (2 * itemsize + 4) + 2 * tile_n * 512 + (2 << 20)
    vmem_limit = int(min(max(base_limit, need), cap - (8 << 20)))

    cost = pl.CostEstimate(
        flops=int(6 * n * c),
        transcendentals=int(n * c + n),
        bytes_accessed=int(n * c * itemsize + n * 4 + n_splits * 2 * 8 * 128 * 4),
    )

    partial_sums, partial_cnts = pl.pallas_call(
        kernel,
        out_shape=(
            jax.ShapeDtypeStruct((n_splits, 8, 128), jnp.float32),
            jax.ShapeDtypeStruct((n_splits, 8, 128), jnp.float32),
        ),
        grid_spec=pltpu.PrefetchScalarGridSpec(
            num_scalar_prefetch=0,
            grid=(n_splits, tiles_per_split),
            in_specs=[
                pl.BlockSpec((tile_n, c), in_map),
                pl.BlockSpec((tile_n, 1), in_map),
            ],
            out_specs=[
                pl.BlockSpec((1, 8, 128), out_map),
                pl.BlockSpec((1, 8, 128), out_map),
            ],
        ),
        compiler_params=pltpu.CompilerParams(
            dimension_semantics=("parallel", "arbitrary"),
            vmem_limit_bytes=vmem_limit,
        ),
        cost_estimate=cost,
    )(outputs, labels2d)

    # Final cross-split reduction + mean in plain JAX (tiny).
    total = jnp.sum(partial_sums[:, 0, 0])
    count = jnp.sum(partial_cnts[:, 0, 0])
    return total / count


if __name__ == "__main__":
    key = jax.random.PRNGKey(0)
    k_logits, k_labels = jax.random.split(key)

    # Small shapes consistent with the module: batch=8 logits over 32 classes.
    N, C = 8, 32
    outputs = jax.random.normal(k_logits, (N, C), dtype=jnp.float32)
    labels = jax.random.randint(k_labels, (N,), 0, C, dtype=jnp.int32)

    loss = classification_loss(outputs, labels)
    jax.block_until_ready(loss)

    ref = jnp.mean(
        jax.nn.logsumexp(outputs, axis=-1)
        - jnp.take_along_axis(outputs, labels[:, None], axis=-1)[:, 0]
    )
    assert jnp.allclose(loss, ref, atol=1e-5, rtol=1e-5), (loss, ref)

    # Second check exercising the tiled + megacore-split path: bf16 logits, N
    # not a multiple of the tile (tail masking, duplicated overflow tile on the
    # second split) and a couple of ignore_index (-100) labels.
    N2, C2 = 300, 160
    o2 = jax.random.normal(k_logits, (N2, C2), dtype=jnp.bfloat16)
    l2 = jax.random.randint(k_labels, (N2,), 0, C2, dtype=jnp.int32)
    l2 = l2.at[5].set(_IGNORE_INDEX).at[123].set(_IGNORE_INDEX)

    loss2 = classification_loss(o2, l2, tile_n=128)   # grid = (2, 2) tiles
    jax.block_until_ready(loss2)

    o2f = o2.astype(jnp.float32)
    valid2 = l2 != _IGNORE_INDEX
    safe_lbl = jnp.where(valid2, l2, 0)
    per2 = (jax.nn.logsumexp(o2f, axis=-1)
            - jnp.take_along_axis(o2f, safe_lbl[:, None], axis=-1)[:, 0])
    ref2 = jnp.sum(jnp.where(valid2, per2, 0.0)) / jnp.sum(valid2)
    assert jnp.allclose(loss2, ref2, atol=1e-3, rtol=1e-3), (loss2, ref2)

    print("KERNEL_OK")
</pallas_src>

<mosaic_0001>
module attributes {stable_mosaic.version = 11 : i64} {
  func.func @_ce_kernel(%arg0: i32, %arg1: i32, %arg2: memref<8x32xf32, #tpu.memory_space<vmem>>, %arg3: memref<8x1xi32, #tpu.memory_space<vmem>>, %arg4: memref<1x8x128xf32, #tpu.memory_space<vmem>>, %arg5: memref<1x8x128xf32, #tpu.memory_space<vmem>>) attributes {dimension_semantics = [#tpu.dimension_semantics<parallel>, #tpu.dimension_semantics<arbitrary>], iteration_bounds = array<i64: 1, 1>, scalar_prefetch = 0 : i64, scratch_operands = 0 : i64, tpu.core_type = #tpu.core_type<tc>, window_params = [{transform_indices = @transform_0, window_bounds = array<i64: 8, 32>}, {transform_indices = @transform_1, window_bounds = array<i64: 8, 1>}, {transform_indices = @transform_2, window_bounds = array<i64: 1, 8, 128>}, {transform_indices = @transform_3, window_bounds = array<i64: 1, 8, 128>}]} {
    %c0_i32 = arith.constant 0 : i32
    %0 = arith.cmpi eq, %arg1, %c0_i32 : i32
    %1 = arith.extui %0 : i1 to i32
    %c0_i32_0 = arith.constant 0 : i32
    %2 = arith.cmpi ne, %1, %c0_i32_0 : i32
    scf.if %2 {
      %cst_23 = arith.constant 0.000000e+00 : f32
      %52 = vector.broadcast %cst_23 : f32 to vector<1x8x128xf32>
      %c0_24 = arith.constant 0 : index
      %c0_25 = arith.constant 0 : index
      %c0_26 = arith.constant 0 : index
      %53 = vector.load %arg4[%c0_24, %c0_25, %c0_26] : memref<1x8x128xf32, #tpu.memory_space<vmem>>, vector<1x8x128xf32>
      tpu.vector_store %arg4[%c0_24, %c0_25, %c0_26], %52 {strides = array<i32>} : memref<1x8x128xf32, #tpu.memory_space<vmem>>, vector<1x8x128xf32>,
      %cst_27 = arith.constant 0.000000e+00 : f32
      %54 = vector.broadcast %cst_27 : f32 to vector<1x8x128xf32>
      %c0_28 = arith.constant 0 : index
      %c0_29 = arith.constant 0 : index
      %c0_30 = arith.constant 0 : index
      %55 = vector.load %arg5[%c0_28, %c0_29, %c0_30] : memref<1x8x128xf32, #tpu.memory_space<vmem>>, vector<1x8x128xf32>
      tpu.vector_store %arg5[%c0_28, %c0_29, %c0_30], %54 {strides = array<i32>} : memref<1x8x128xf32, #tpu.memory_space<vmem>>, vector<1x8x128xf32>,
    } else {
    }
    %c0 = arith.constant 0 : index
    %c0_1 = arith.constant 0 : index
    %3 = vector.load %arg2[%c0, %c0_1] : memref<8x32xf32, #tpu.memory_space<vmem>>, vector<8x32xf32>
    %c0_2 = arith.constant 0 : index
    %c0_3 = arith.constant 0 : index
    %4 = vector.load %arg3[%c0_2, %c0_3] : memref<8x1xi32, #tpu.memory_space<vmem>>, vector<8x1xi32>
    %cst = arith.constant dense<0xFF800000> : vector<8xf32>
    %5 = vector.multi_reduction <maximumf>, %3, %cst [1] : vector<8x32xf32> to vector<8xf32>
    %6 = vector.shape_cast %5 : vector<8xf32> to vector<8x1xf32>
    %7 = vector.broadcast %6 : vector<8x1xf32> to vector<8x32xf32>
    %8 = arith.subf %3, %7 : vector<8x32xf32>
    %9 = math.exp %8 : vector<8x32xf32>
    %cst_4 = arith.constant dense<0.000000e+00> : vector<8xf32>
    %10 = vector.multi_reduction <add>, %9, %cst_4 [1] : vector<8x32xf32> to vector<8xf32>
    %11 = vector.shape_cast %10 : vector<8xf32> to vector<8x1xf32>
    %12 = tpu.iota {dimensions = array<i32: 1>} : vector<8x32xi32>
    %13 = vector.broadcast %4 : vector<8x1xi32> to vector<8x32xi32>
    %14 = arith.cmpi eq, %12, %13 : vector<8x32xi32>
    %cst_5 = arith.constant 0.000000e+00 : f32
    %15 = vector.broadcast %cst_5 : f32 to vector<8x32xf32>
    %16 = arith.select %14, %8, %15 : vector<8x32xi1>, vector<8x32xf32>
    %cst_6 = arith.constant dense<0.000000e+00> : vector<8xf32>
    %17 = vector.multi_reduction <add>, %16, %cst_6 [1] : vector<8x32xf32> to vector<8xf32>
    %18 = vector.shape_cast %17 : vector<8xf32> to vector<8x1xf32>
    %19 = math.log %11 : vector<8x1xf32>
    %20 = arith.subf %19, %18 : vector<8x1xf32>
    %c1_i32 = arith.constant 1 : i32
    %21 = arith.muli %arg0, %c1_i32 : i32
    %22 = arith.addi %21, %arg1 : i32
    %c8_i32 = arith.constant 8 : i32
    %23 = arith.muli %22, %c8_i32 : i32
    %24 = tpu.iota {dimensions = array<i32: 0>} : vector<8x1xi32>
    %25 = vector.broadcast %23 : i32 to vector<8x1xi32>
    %26 = arith.addi %25, %24 : vector<8x1xi32>
    %c8_i32_7 = arith.constant 8 : i32
    %27 = vector.broadcast %c8_i32_7 : i32 to vector<8x1xi32>
    %28 = arith.cmpi slt, %26, %27 : vector<8x1xi32>
    %c-100_i32 = arith.constant -100 : i32
    %29 = vector.broadcast %c-100_i32 : i32 to vector<8x1xi32>
    %30 = arith.cmpi ne, %4, %29 : vector<8x1xi32>
    %31 = arith.andi %28, %30 : vector<8x1xi1>
    %cst_8 = arith.constant 0.000000e+00 : f32
    %32 = vector.broadcast %cst_8 : f32 to vector<8x1xf32>
    %33 = arith.select %31, %20, %32 : vector<8x1xi1>, vector<8x1xf32>
    %34 = vector.shape_cast %33 : vector<8x1xf32> to vector<1x8x1xf32>
    %cst_9 = arith.constant dense<0.000000e+00> : vector<1xf32>
    %35 = vector.multi_reduction <add>, %34, %cst_9 [1, 2] : vector<1x8x1xf32> to vector<1xf32>
    %36 = vector.shape_cast %35 : vector<1xf32> to vector<1x1x1xf32>
    %37 = vector.extract %36[0, 0, 0] : f32 from vector<1x1x1xf32>
    %38 = arith.extui %31 : vector<8x1xi1> to vector<8x1xi32>
    %39 = arith.sitofp %38 : vector<8x1xi32> to vector<8x1xf32>
    %40 = vector.shape_cast %39 : vector<8x1xf32> to vector<1x8x1xf32>
    %cst_10 = arith.constant dense<0.000000e+00> : vector<1xf32>
    %41 = vector.multi_reduction <add>, %40, %cst_10 [1, 2] : vector<1x8x1xf32> to vector<1xf32>
    %42 = vector.shape_cast %41 : vector<1xf32> to vector<1x1x1xf32>
    %43 = vector.extract %42[0, 0, 0] : f32 from vector<1x1x1xf32>
    %c0_11 = arith.constant 0 : index
    %c0_12 = arith.constant 0 : index
    %c0_13 = arith.constant 0 : index
    %44 = vector.load %arg4[%c0_11, %c0_12, %c0_13] : memref<1x8x128xf32, #tpu.memory_space<vmem>>, vector<1x8x128xf32>
    %45 = vector.broadcast %37 : f32 to vector<1x8x128xf32>
    %46 = arith.addf %44, %45 : vector<1x8x128xf32>
    %c0_14 = arith.constant 0 : index
    %c0_15 = arith.constant 0 : index
    %c0_16 = arith.constant 0 : index
    %47 = vector.load %arg4[%c0_14, %c0_15, %c0_16] : memref<1x8x128xf32, #tpu.memory_space<vmem>>, vector<1x8x128xf32>
    tpu.vector_store %arg4[%c0_14, %c0_15, %c0_16], %46 {strides = array<i32>} : memref<1x8x128xf32, #tpu.memory_space<vmem>>, vector<1x8x128xf32>,
    %c0_17 = arith.constant 0 : index
    %c0_18 = arith.constant 0 : index
    %c0_19 = arith.constant 0 : index
    %48 = vector.load %arg5[%c0_17, %c0_18, %c0_19] : memref<1x8x128xf32, #tpu.memory_space<vmem>>, vector<1x8x128xf32>
    %49 = vector.broadcast %43 : f32 to vector<1x8x128xf32>
    %50 = arith.addf %48, %49 : vector<1x8x128xf32>
    %c0_20 = arith.constant 0 : index
    %c0_21 = arith.constant 0 : index
    %c0_22 = arith.constant 0 : index
    %51 = vector.load %arg5[%c0_20, %c0_21, %c0_22] : memref<1x8x128xf32, #tpu.memory_space<vmem>>, vector<1x8x128xf32>
    tpu.vector_store %arg5[%c0_20, %c0_21, %c0_22], %50 {strides = array<i32>} : memref<1x8x128xf32, #tpu.memory_space<vmem>>, vector<1x8x128xf32>,
    return
  }
  func.func @transform_0(%arg0: i32, %arg1: i32) -> (i32, i32) {
    %c1_i32 = arith.constant 1 : i32
    %0 = arith.muli %arg0, %c1_i32 : i32
    %1 = arith.addi %0, %arg1 : i32
    %c0_i32 = arith.constant 0 : i32
    %2 = arith.minsi %1, %c0_i32 : i32
    %c0_i32_0 = arith.constant 0 : i32
    %c0_i32_1 = arith.constant 0 : i32
    return %2, %c0_i32_0 : i32, i32
  }
  func.func @transform_1(%arg0: i32, %arg1: i32) -> (i32, i32) {
    %c1_i32 = arith.constant 1 : i32
    %0 = arith.muli %arg0, %c1_i32 : i32
    %1 = arith.addi %0, %arg1 : i32
    %c0_i32 = arith.constant 0 : i32
    %2 = arith.minsi %1, %c0_i32 : i32
    %c0_i32_0 = arith.constant 0 : i32
    %c0_i32_1 = arith.constant 0 : i32
    return %2, %c0_i32_0 : i32, i32
  }
  func.func @transform_2(%arg0: i32, %arg1: i32) -> (i32, i32, i32) {
    %c0_i32 = arith.constant 0 : i32
    %c0_i32_0 = arith.constant 0 : i32
    %c0_i32_1 = arith.constant 0 : i32
    return %arg0, %c0_i32, %c0_i32_0 : i32, i32, i32
  }
  func.func @transform_3(%arg0: i32, %arg1: i32) -> (i32, i32, i32) {
    %c0_i32 = arith.constant 0 : i32
    %c0_i32_0 = arith.constant 0 : i32
    %c0_i32_1 = arith.constant 0 : i32
    return %arg0, %c0_i32, %c0_i32_0 : i32, i32, i32
  }
}

</mosaic_0001>

<bundles_post_ra>
// kernel: tpu_custom_call.1
= control target key start
LH: loop header
LB: loop body
LE: loop exit
PB: predicated region body
PF: predicated region fallthrough
CT: control target
= control target key end

     0   :  { %9 = vsyncpa [#allocation3], 0  ;;  %vm77_vm0 = vcmask 261120   ;;  %s300_s0 = inlined_call_operand.vmem [shape: f32[8,32], index: 0, kind: input, shape index: {}]   ;;  %s301_s1 = inlined_call_operand.vmem [shape: s32[8,1], index: 1, kind: input, shape index: {}]   ;;  %s302_s2 = inlined_call_operand.hbm [shape: f32[1,8,128], index: 2, kind: output, shape index: {0}]   ;;  %s303_s3 = inlined_call_operand.hbm [shape: f32[1,8,128], index: 3, kind: output, shape index: {1}]  }
   0x1   :  { %v75_v0 = vld [vmem:[%s300_s0] sm:$0xff] }
   0x2   :  { %10 = vsyncpa [#allocation5], 0  ;;  %v78_v1 = vsel %vm77_vm0, %v75_v0, -inf  ;;  %v243_v2 = vmov 0   ;;  %v76_v3 = vld [vmem:[%s301_s1] sm:$0xff]  ;;  %v87_v7 = vlaneseq  ;;  %vm110_vm3 = vcmask 7168  }
   0x3   :  { %190 = vset.pattern.permute.xlu0 %v243_v2  ;;  %vm107_vm2 = vcmp.ne.s32.totalorder %v76_v3, 4294967196  ;;  %v244_v20 = vmov 0.0   ;;  %s245_s0 = smov [#allocation2]   ;;  %s246_s17 = smov [#allocation4]  }
   0x4   :  { %79 = vmax.xlane.f32.xlu0 %v78_v1  ;;  %v88_v8 = vand.u32 127, %v87_v7  ;;  %v181_v21 = vsel %vm107_vm2, 1.0, %v244_v20  ;;  %s147_s1 = sshll.u32 %s245_s0, 4  ;;  %s157_s18 = sshll.u32 %s246_s17, 4  ;;  %s148_s1 = int_to_ptr.vmem [resolvable:$true] %s147_s1  ;;  %s158_s18 = int_to_ptr.vmem [resolvable:$true] %s157_s18 }
   0x5   :  { %v123_v23 = vsel %vm110_vm3, %v181_v21, 0.0  ;;  %s195_s20 = scalar_lea.vmem %s148_s1, 128  ;;  %p200_p1 = scmp.lt.s32.totalorder %s148_s1, %s148_s1 }
   0x6   :  { %p196_p0 = scmp.ne.s32.totalorder %s148_s1, %s195_s20  ;;  %p201_p2 = scmp.lt.s32.totalorder %s195_s20, %s195_s20 }
   0x8   :  { %p202_p3 = por %p201_p2, %p200_p1 }
   0xa   :  { %p203_p4 = pnand %p202_p3, %p196_p0 }
  0x1a   :  { %90 = vperm.xlu0 %190, %v76_v3  }
  0x91   :  { %v80_v4 = vpop.xlane.xlu0 %79 }
  0x92   :  { %v81_v5 = vsub.f32 %v75_v0, %v80_v4 }
  0x94   :  { %v82_v6 = vmul.f32 1.442695, %v81_v5 }
  0x96   :  { %191 = vpow2.f32 %v82_v6 }
  0x99   :  { %v91_v9 = vpop.permute.xlu0 %90 }
  0x9a   :  { %vm92_vm1 = vcmp.eq.s32.totalorder %v88_v8, %v91_v9 }
  0x9b   :  { %v93_v12 = vsel %vm92_vm1, %v81_v5, 0.0 }
  0x9c   :  { %v94_v13 = vsel %vm77_vm0, %v93_v12, 0.0 }
  0xa0   :  { %v192_v10 = vpop.eup %191 }
  0xa1   :  { %v84_v11 = vsel %vm77_vm0, %v192_v10, 0.0 }
  0xa2   :  { %85 = vadd.xlane.f32.xlu1 %v84_v11 }
  0xa6   :  { %95 = vadd.xlane.f32.xlu1 %v94_v13 }
 0x12f   :  { %v86_v14 = vpop.xlane.xlu1 %85 }
 0x130   :  { %193 = vlog2.f32 %v86_v14 }
 0x133   :  { %v96_v17 = vpop.xlane.xlu1 %95 }
 0x13a   :  { %v194_v15 = vpop.eup %193 }
 0x13b   :  { %v98_v16 = vmul.f32 0.6931472, %v194_v15 }
 0x13d   :  { %v99_v18 = vsub.f32 %v98_v16, %v96_v17 }
 0x13f   :  { %v109_v19 = vsel %vm107_vm2, %v99_v18, 0.0 }
 0x140   :  { %v111_v22 = vsel %vm110_vm3, %v109_v19, 0.0 }
 0x141   :  { %112 = vadd.xlane.f32.xlu1 %v111_v22 }
 0x145   :  { %124 = vadd.xlane.f32.xlu1 %v123_v23 }
 0x1ce   :  { %v113_v24 = vpop.xlane.xlu1 %112 }
 0x1cf   :  { %v114_v25 = vrot.slane %v113_v24, 4 }
 0x1d1   :  { %v115_v26 = vadd.f32 %v114_v25, %v113_v24 }
 0x1d2   :  { %v125_v27 = vpop.xlane.xlu1 %124 }
 0x1d3   :  { %v116_v28 = vrot.slane %v115_v26, 2  ;;  %v126_v29 = vrot.slane %v125_v27, 4 }
 0x1d5   :  { %v127_v30 = vadd.f32 %v126_v29, %v125_v27  ;;  %v117_v31 = vadd.f32 %v116_v28, %v115_v26 }
 0x1d7   :  { %v128_v32 = vrot.slane %v127_v30, 2  ;;  %v118_v33 = vrot.slane %v117_v31, 1 }
 0x1d9   :  { %v129_v34 = vadd.f32 %v128_v32, %v127_v30  ;;  %v119_v35 = vadd.f32 %v118_v33, %v117_v31 }
 0x1db   :  { %182 = vpush %v119_v35  ;;  %v130_v36 = vrot.slane %v129_v34, 1 }
 0x1dd   :  { %v131_v37 = vadd.f32 %v130_v36, %v129_v34 }
 0x1df   :  { %184 = vpush %v131_v37 }
 0x20c   :  { %s183_s16 = spop %182 }
 0x20d   :  { %v134_v38 = vstv %s183_s16 }
 0x20e   :  { %136 = vst [vmem:[#allocation2] sm:$0xff] %v134_v38 }
 0x210   :  { %s185_s19 = spop %184 }
 0x211   :  { %v138_v39 = vstv %s185_s19 }
 0x212   :  { %206 = shalt.err (!%p203_p4)
}
 0x213   :  { %s207_s23 = scalar_lea.hbm %s302_s2, 128 }
 0x214   :  { %p208_p5 = scmp.ne.s32.totalorder %s302_s2, %s207_s23  ;;  %p211_p6 = scmp.lt.u32.totalorder %s207_s23, %s302_s2 }
 0x216   :  { %p213_p7 = pnand %p211_p6, %p208_p5 }
 0x218   :  { %216 = shalt.err (!%p213_p7)
}
 0x219   :  { %150 = dma.vmem_to_hbm [thread:$0]  %s148_s1, 128, %s302_s2, [#allocation3]   ;;  %140 = vst [vmem:[#allocation4] sm:$0xff] %v138_v39 }
 0x21a   :  { %s217_s30 = scalar_lea.vmem %s158_s18, 128  ;;  %p222_p9 = scmp.lt.s32.totalorder %s158_s18, %s158_s18 }
 0x21b   :  { %p218_p8 = scmp.ne.s32.totalorder %s158_s18, %s217_s30  ;;  %p223_p10 = scmp.lt.s32.totalorder %s217_s30, %s217_s30 }
 0x21d   :  { %p224_p11 = por %p223_p10, %p222_p9 }
 0x21f   :  { %p225_p12 = pnand %p224_p11, %p218_p8 }
 0x221   :  { %228 = shalt.err (!%p225_p12)
}
 0x222   :  { %s229_s6 = scalar_lea.hbm %s303_s3, 128 }
 0x223   :  { %p230_p13 = scmp.ne.s32.totalorder %s303_s3, %s229_s6  ;;  %p233_p0 = scmp.lt.u32.totalorder %s229_s6, %s303_s3 }
 0x225   :  { %p235_p1 = pnand %p233_p0, %p230_p13 }
 0x227   :  { %238 = shalt.err (!%p235_p1)
}
 0x228   :  { %160 = dma.vmem_to_hbm [thread:$0]  %s158_s18, 128, %s303_s3, [#allocation5]  }
 0x229   :  { %239 = dma.done.wait [#allocation3], 128  }
 0x22a   :  { %240 = vsyncadd [#allocation3], 4294967168 }
 0x22b   :  { %241 = dma.done.wait [#allocation5], 128  }
 0x22c   :  { %242 = vsyncadd [#allocation5], 4294967168 }
 0x22d   :  { %167 = vsyncpa [#allocation3], 1 }
 0x22e   :  { %168 = vsyncpa [#allocation5], 1 }

</bundles_post_ra>
